<compile_context>
chip_gen: v7x
topology: tpu7x:2x2x1
jax: 0.10.0
libtpu: 0.0.40
codegen_flags: <defaults>
</compile_context>

<pallas_src>
import functools

import jax
import jax.numpy as jnp
from jax.experimental import pallas as pl
from jax.experimental.pallas import tpu as pltpu


def _round_up(a: int, b: int) -> int:
    return ((a + b - 1) // b) * b


def _nn0d_kernel(x_ref, w1_ref, b1_ref, w2_ref, b2_ref, o_ref):
    # x streams per tile; cast it to the (pre-cast) weight dtype here. Weights were
    # already cast once in the wrapper, so there is no per-step cast work for them.
    x = x_ref[...].astype(w1_ref.dtype)

    # fc1 + bias + ReLU (bias/ReLU ride VPU slots under the MXU; f32 accumulate).
    h = jnp.dot(x, w1_ref[...], preferred_element_type=jnp.float32)
    h = jnp.maximum(h + b1_ref[...], 0.0)

    # Dropout(p=0.7) in eval mode == identity.

    # fc2 + bias + sigmoid (exp goes to the EUP slot).
    h = h.astype(w2_ref.dtype)
    y = jnp.dot(h, w2_ref[...], preferred_element_type=jnp.float32)
    o_ref[...] = jax.nn.sigmoid(y + b2_ref[...])


def _pick_batch_tile(n: int, tm_target: int) -> int:
    """Sublane-aligned batch tile.

    - large tiles (default target 4096) so per-grid-step overhead (~0.35 us) amortizes,
    - but bounded so that large N still yields >= ~8 grid steps (keeps both v7x
      TensorCores busy under dimension_semantics=("parallel",)),
    - and never larger than the (8-aligned) batch itself.
    """
    n_per_8steps = _round_up(pl.cdiv(n, 8), 8)      # tile that would give ~8 steps
    tm = min(tm_target, max(256, n_per_8steps))     # floor 256 rows/step (overhead)
    tm = min(tm, _round_up(n, 8))                   # don't exceed the batch
    return max(8, _round_up(tm, 8))


@functools.partial(jax.jit, static_argnames=("tm", "use_bf16"))
def nn0d_forward(x, w1, b1, w2, b2, *, tm: int = 4096, use_bf16: bool = True):
    """Forward pass of NN0d.

    x : [N, D_in]
    w1: [D_in, H]   (transposed vs. PyTorch), b1: [1, H]
    w2: [H, D_out]  (transposed vs. PyTorch), b2: [1, D_out]
    """
    x = x.astype(jnp.float32)
    w1 = w1.astype(jnp.float32)
    b1 = b1.astype(jnp.float32).reshape(1, -1)
    w2 = w2.astype(jnp.float32)
    b2 = b2.astype(jnp.float32).reshape(1, -1)

    N, d_in = x.shape
    H = w1.shape[1]
    D_out = w2.shape[1]

    # --- pad hidden dim to a lane-aligned multiple of 128 (254 -> 256). ---
    # Zero padding keeps the result bit-identical: ReLU(0*x + 0) = 0 rows of w2_pad.
    H_pad = _round_up(H, 128)
    if H_pad != H:
        w1 = jnp.pad(w1, ((0, 0), (0, H_pad - H)))
        b1 = jnp.pad(b1, ((0, 0), (0, H_pad - H)))
        w2 = jnp.pad(w2, ((0, H_pad - H), (0, 0)))

    # --- hoist matmul-operand dtype cast out of the kernel (weights are tiny). ---
    mm_dtype = jnp.bfloat16 if use_bf16 else jnp.float32
    w1 = w1.astype(mm_dtype)
    w2 = w2.astype(mm_dtype)
    # Biases stay f32 (added to the f32 accumulator).

    # --- batch tile; ragged last block instead of a jnp.pad copy of x. ---
    tm_eff = _pick_batch_tile(N, tm)
    grid = (pl.cdiv(N, tm_eff),)

    out = pl.pallas_call(
        _nn0d_kernel,
        out_shape=jax.ShapeDtypeStruct((N, D_out), jnp.float32),
        grid=grid,
        in_specs=[
            pl.BlockSpec((tm_eff, d_in), lambda i: (i, 0)),    # x: streamed over batch
            pl.BlockSpec((d_in, H_pad), lambda i: (0, 0)),     # w1: VMEM-resident
            pl.BlockSpec((1, H_pad), lambda i: (0, 0)),        # b1: VMEM-resident
            pl.BlockSpec((H_pad, D_out), lambda i: (0, 0)),    # w2: VMEM-resident
            pl.BlockSpec((1, D_out), lambda i: (0, 0)),        # b2: VMEM-resident
        ],
        out_specs=pl.BlockSpec((tm_eff, D_out), lambda i: (i, 0)),
        compiler_params=pltpu.CompilerParams(
            dimension_semantics=("parallel",),        # shard batch tiles across TCs
            vmem_limit_bytes=32 * 1024 * 1024,        # raise v5e's 16 MiB scoped default
        ),
    )(x, w1, b1, w2, b2)

    return out


def init_linear(key, fan_in, fan_out):
    """Deterministic PyTorch-style Linear init: U(-1/sqrt(fan_in), 1/sqrt(fan_in)).
    Returns (W [fan_in, fan_out], b [1, fan_out])."""
    kw, kb = jax.random.split(key)
    bound = 1.0 / jnp.sqrt(jnp.float32(fan_in))
    w = jax.random.uniform(kw, (fan_in, fan_out), jnp.float32, -bound, bound)
    b = jax.random.uniform(kb, (1, fan_out), jnp.float32, -bound, bound)
    return w, b


def _reference(x, w1, b1, w2, b2):
    return jax.nn.sigmoid(jnp.maximum(x @ w1 + b1, 0.0) @ w2 + b2)


if __name__ == "__main__":
    input_size = 32
    output_size = 8
    hidden = 254
    batch = 8

    key = jax.random.PRNGKey(0)
    kx, kxb, kxc, k1, k2 = jax.random.split(key, 5)

    x = jax.random.normal(kx, (batch, input_size), jnp.float32)
    w1, b1 = init_linear(k1, input_size, hidden)
    w2, b2 = init_linear(k2, hidden, output_size)
    ref = _reference(x, w1, b1, w2, b2)

    # --- pure-f32 matmul path (matches module semantics modulo f64 -> f32) ---
    out_f32 = nn0d_forward(x, w1, b1, w2, b2, use_bf16=False)
    jax.block_until_ready(out_f32)
    assert out_f32.shape == (batch, output_size)
    assert jnp.allclose(out_f32, ref, atol=1e-5, rtol=1e-5)

    # --- default bf16-MXU path (v5e/v6e/v7x), looser tolerance ---
    out_bf16 = nn0d_forward(x, w1, b1, w2, b2)
    jax.block_until_ready(out_bf16)
    assert jnp.allclose(out_bf16, ref, atol=3e-2)

    # --- multi-tile grid with a ragged last block (N not a multiple of the tile) ---
    xb = jax.random.normal(kxb, (1000, input_size), jnp.float32)
    outb = nn0d_forward(xb, w1, b1, w2, b2)   # tm_eff=256 -> grid=4, last block ragged
    jax.block_until_ready(outb)
    refb = _reference(xb, w1, b1, w2, b2)
    assert outb.shape == (1000, output_size)
    assert jnp.allclose(outb, refb, atol=3e-2)

    # --- evenly-dividing multi-tile grid (exercises 8-step / 2-TC sharding path) ---
    xc = jax.random.normal(kxc, (2048, input_size), jnp.float32)
    outc = nn0d_forward(xc, w1, b1, w2, b2)   # tm_eff=256 -> grid=8
    jax.block_until_ready(outc)
    refc = _reference(xc, w1, b1, w2, b2)
    assert outc.shape == (2048, output_size)
    assert jnp.allclose(outc, refc, atol=3e-2)

    print("KERNEL_OK")
</pallas_src>

<mosaic_0001>
module attributes {stable_mosaic.version = 11 : i64} {
  func.func @_nn0d_kernel(%arg0: i32, %arg1: memref<8x32xf32, #tpu.memory_space<vmem>>, %arg2: memref<32x256xf32, #tpu.memory_space<vmem>>, %arg3: memref<1x256xf32, #tpu.memory_space<vmem>>, %arg4: memref<256x8xf32, #tpu.memory_space<vmem>>, %arg5: memref<1x8xf32, #tpu.memory_space<vmem>>, %arg6: memref<8x8xf32, #tpu.memory_space<vmem>>) attributes {dimension_semantics = [#tpu.dimension_semantics<parallel>], iteration_bounds = array<i64: 1>, scalar_prefetch = 0 : i64, scratch_operands = 0 : i64, tpu.core_type = #tpu.core_type<tc>, window_params = [{transform_indices = @transform_0, window_bounds = array<i64: 8, 32>}, {pipeline_mode = #tpu.pipeline_mode<synchronous>, transform_indices = @transform_1, window_bounds = array<i64: 32, 256>}, {pipeline_mode = #tpu.pipeline_mode<synchronous>, transform_indices = @transform_2, window_bounds = array<i64: 1, 256>}, {pipeline_mode = #tpu.pipeline_mode<synchronous>, transform_indices = @transform_3, window_bounds = array<i64: 256, 8>}, {pipeline_mode = #tpu.pipeline_mode<synchronous>, transform_indices = @transform_4, window_bounds = array<i64: 1, 8>}, {transform_indices = @transform_5, window_bounds = array<i64: 8, 8>}]} {
    %c0 = arith.constant 0 : index
    %c0_0 = arith.constant 0 : index
    %0 = vector.load %arg1[%c0, %c0_0] : memref<8x32xf32, #tpu.memory_space<vmem>>, vector<8x32xf32>
    %c0_1 = arith.constant 0 : index
    %c0_2 = arith.constant 0 : index
    %1 = vector.load %arg2[%c0_1, %c0_2] : memref<32x256xf32, #tpu.memory_space<vmem>>, vector<32x256xf32>
    %cst = arith.constant dense<0.000000e+00> : vector<8x256xf32>
    %2 = tpu.matmul %0, %1, %cst {dimension_numbers = #tpu.dot_dimension_numbers<[1], [0], [0], [1], [0, 0, 1, 1], [], []>} : vector<8x32xf32>, vector<32x256xf32>, vector<8x256xf32> -> vector<8x256xf32>
    %c0_3 = arith.constant 0 : index
    %c0_4 = arith.constant 0 : index
    %3 = vector.load %arg3[%c0_3, %c0_4] : memref<1x256xf32, #tpu.memory_space<vmem>>, vector<1x256xf32>
    %4 = vector.broadcast %3 : vector<1x256xf32> to vector<8x256xf32>
    %5 = arith.addf %2, %4 : vector<8x256xf32>
    %cst_5 = arith.constant 0.000000e+00 : f32
    %6 = vector.broadcast %cst_5 : f32 to vector<8x256xf32>
    %7 = arith.maximumf %5, %6 : vector<8x256xf32>
    %c0_6 = arith.constant 0 : index
    %c0_7 = arith.constant 0 : index
    %8 = vector.load %arg4[%c0_6, %c0_7] : memref<256x8xf32, #tpu.memory_space<vmem>>, vector<256x8xf32>
    %cst_8 = arith.constant dense<0.000000e+00> : vector<8x8xf32>
    %9 = tpu.matmul %7, %8, %cst_8 {dimension_numbers = #tpu.dot_dimension_numbers<[1], [0], [0], [1], [0, 0, 1, 1], [], []>} : vector<8x256xf32>, vector<256x8xf32>, vector<8x8xf32> -> vector<8x8xf32>
    %c0_9 = arith.constant 0 : index
    %c0_10 = arith.constant 0 : index
    %10 = vector.load %arg5[%c0_9, %c0_10] : memref<1x8xf32, #tpu.memory_space<vmem>>, vector<1x8xf32>
    %11 = vector.broadcast %10 : vector<1x8xf32> to vector<8x8xf32>
    %12 = arith.addf %9, %11 : vector<8x8xf32>
    %13 = arith.negf %12 : vector<8x8xf32>
    %14 = math.exp %13 : vector<8x8xf32>
    %cst_11 = arith.constant 1.000000e+00 : f32
    %15 = vector.broadcast %cst_11 : f32 to vector<8x8xf32>
    %16 = arith.addf %15, %14 : vector<8x8xf32>
    %17 = arith.divf %15, %16 : vector<8x8xf32>
    %c0_12 = arith.constant 0 : index
    %c0_13 = arith.constant 0 : index
    %18 = vector.load %arg6[%c0_12, %c0_13] : memref<8x8xf32, #tpu.memory_space<vmem>>, vector<8x8xf32>
    tpu.vector_store %arg6[%c0_12, %c0_13], %17 {strides = array<i32>} : memref<8x8xf32, #tpu.memory_space<vmem>>, vector<8x8xf32>,
    return
  }
  func.func @transform_0(%arg0: i32) -> (i32, i32) {
    %c0_i32 = arith.constant 0 : i32
    %c0_i32_0 = arith.constant 0 : i32
    return %arg0, %c0_i32 : i32, i32
  }
  func.func @transform_1(%arg0: i32) -> (i32, i32) {
    %c0_i32 = arith.constant 0 : i32
    %c0_i32_0 = arith.constant 0 : i32
    %c0_i32_1 = arith.constant 0 : i32
    return %c0_i32, %c0_i32_0 : i32, i32
  }
  func.func @transform_2(%arg0: i32) -> (i32, i32) {
    %c0_i32 = arith.constant 0 : i32
    %c0_i32_0 = arith.constant 0 : i32
    %c0_i32_1 = arith.constant 0 : i32
    return %c0_i32, %c0_i32_0 : i32, i32
  }
  func.func @transform_3(%arg0: i32) -> (i32, i32) {
    %c0_i32 = arith.constant 0 : i32
    %c0_i32_0 = arith.constant 0 : i32
    %c0_i32_1 = arith.constant 0 : i32
    return %c0_i32, %c0_i32_0 : i32, i32
  }
  func.func @transform_4(%arg0: i32) -> (i32, i32) {
    %c0_i32 = arith.constant 0 : i32
    %c0_i32_0 = arith.constant 0 : i32
    %c0_i32_1 = arith.constant 0 : i32
    return %c0_i32, %c0_i32_0 : i32, i32
  }
  func.func @transform_5(%arg0: i32) -> (i32, i32) {
    %c0_i32 = arith.constant 0 : i32
    %c0_i32_0 = arith.constant 0 : i32
    return %arg0, %c0_i32 : i32, i32
  }
}

</mosaic_0001>

<bundles_post_ra>
// kernel: nn0d_forward.1
= control target key start
LH: loop header
LB: loop body
LE: loop exit
PB: predicated region body
PF: predicated region fallthrough
CT: control target
= control target key end

     0   :  { %v358_v7 = vmov 0.0   ;;  %vm42_vm0 = vcmask 261120   ;;  %s531_s0 = inlined_call_operand.vmem [shape: f32[8,32], index: 0, kind: input, shape index: {}]   ;;  %s532_s1 = inlined_call_operand.vmem [shape: f32[32,256], index: 1, kind: input, shape index: {}]   ;;  %s533_s2 = inlined_call_operand.vmem [shape: f32[1,256], index: 2, kind: input, shape index: {}]   ;;  %s534_s3 = inlined_call_operand.vmem [shape: f32[256,8], index: 3, kind: input, shape index: {}]   ;;  %s535_s4 = inlined_call_operand.vmem [shape: f32[1,8], index: 4, kind: input, shape index: {}]   ;;  %s536_s5 = inlined_call_operand.hbm [shape: f32[8,8], index: 5, kind: output, shape index: {}]  }
   0x1   :  { %v23_v0 = vld [vmem:[%s532_s1 + $0x8] sm:$0xff]  ;;  %v25_v1 = vld [vmem:[%s532_s1 + $0x18] sm:$0xff]  ;;  %v22_v2 = vld [vmem:[%s532_s1] sm:$0xff]  ;;  %110 = vmatprep.mubr.f32.mxu0 %v358_v7 }
   0x2   :  { %v288_v3 = vpack.c.bf16 %v25_v1, %v23_v0  ;;  %v24_v4 = vld [vmem:[%s532_s1 + $0x10] sm:$0xff]  ;;  %v27_v5 = vld [vmem:[%s532_s1 + $0x28] sm:$0xff]  ;;  %v29_v6 = vld [vmem:[%s532_s1 + $0x38] sm:$0xff] }
   0x3   :  { %v290_v8 = vpack.c.bf16 %v24_v4, %v22_v2  ;;  %v292_v9 = vpack.c.bf16 %v29_v6, %v27_v5  ;;  %v26_v10 = vld [vmem:[%s532_s1 + $0x20] sm:$0xff]  ;;  %v28_v11 = vld [vmem:[%s532_s1 + $0x30] sm:$0xff]  ;;  %v136_v13 = vld [vmem:[%s534_s3 + $0x88] sm:$0xff] }
   0x4   :  { %289 = vmatprep.subr.bf16.mxu0 %v288_v3  ;;  %v135_v12 = vld [vmem:[%s534_s3 + $0x80] sm:$0xff]  ;;  %v294_v15 = vpack.c.bf16 %v28_v11, %v26_v10  ;;  %v120_v17 = vld [vmem:[%s534_s3 + $0x8] sm:$0xff]  ;;  %v137_v18 = vld [vmem:[%s534_s3 + $0x90] sm:$0xff] }
   0x5   :  { %v119_v14 = vld [vmem:[%s534_s3] sm:$0xff]  ;;  %291 = vmatpush1.bf16.msra.mxu0 %v290_v8  ;;  %v296_v16 = vpack.c.bf16 %v136_v13, %v135_v12  ;;  %v138_v19 = vld [vmem:[%s534_s3 + $0x98] sm:$0xff]  ;;  %v121_v22 = vld [vmem:[%s534_s3 + $0x10] sm:$0xff] }
   0x6   :  { %293 = vmatprep.subr.bf16.mxu0 %v292_v9  ;;  %v298_v20 = vpack.c.bf16 %v120_v17, %v119_v14  ;;  %v300_v21 = vpack.c.bf16 %v138_v19, %v137_v18  ;;  %v122_v23 = vld [vmem:[%s534_s3 + $0x18] sm:$0xff]  ;;  %v139_v24 = vld [vmem:[%s534_s3 + $0xa0] sm:$0xff]  ;;  %v140_v25 = vld [vmem:[%s534_s3 + $0xa8] sm:$0xff] }
   0x7   :  { %297 = vmatprep.subr.bf16.mxu1 %v296_v16  ;;  %v302_v26 = vpack.c.bf16 %v122_v23, %v121_v22  ;;  %v21_v27 = vld [vmem:[%s531_s0] sm:$0xff]  ;;  %v304_v28 = vpack.c.bf16 %v140_v25, %v139_v24  ;;  %v124_v30 = vld [vmem:[%s534_s3 + $0x28] sm:$0xff]  ;;  %v141_v31 = vld [vmem:[%s534_s3 + $0xb0] sm:$0xff] }
   0x8   :  { %299 = vmatpush3.bf16.msra.mxu1 %v298_v20  ;;  %v123_v29 = vld [vmem:[%s534_s3 + $0x20] sm:$0xff]  ;;  %v142_v32 = vld [vmem:[%s534_s3 + $0xb8] sm:$0xff]  ;;  %v125_v35 = vld [vmem:[%s534_s3 + $0x30] sm:$0xff] }
   0x9   :  { %295 = vmatpush1.bf16.msra.mxu0 %v294_v15  ;;  %301 = vmatprep.subr.bf16.mxu1 %v300_v21  ;;  %v306_v33 = vpack.c.bf16 %v124_v30, %v123_v29  ;;  %v308_v34 = vpack.c.bf16 %v142_v32, %v141_v31  ;;  %v126_v36 = vld [vmem:[%s534_s3 + $0x38] sm:$0xff] }
   0xc   :  { %250 = vmatmul.mubr.msk.f32.vlgmr.msra.gmra.mrb[0].mxu0 %vm42_vm0, %v21_v27  ;;  %303 = vmatpush3.bf16.msra.mxu1 %v302_v26 }
   0xd   :  { %305 = vmatprep.subr.bf16.mxu1 %v304_v28 }
   0xe   :  { %10 = vsyncpa [#allocation3], 0  ;;  %v143_v37 = vld [vmem:[%s534_s3 + $0xc0] sm:$0xff]  ;;  %v144_v38 = vld [vmem:[%s534_s3 + $0xc8] sm:$0xff]  ;;  %v310_v39 = vpack.c.bf16 %v126_v36, %v125_v35  ;;  %v32_v62 = vlaneseq  ;;  %vm234_vm1 = vcmask 64512  }
   0xf   :  { %v312_v40 = vpack.c.bf16 %v144_v38, %v143_v37  ;;  %v127_v41 = vld [vmem:[%s534_s3 + $0x40] sm:$0xff]  ;;  %v128_v42 = vld [vmem:[%s534_s3 + $0x48] sm:$0xff]  ;;  %v145_v43 = vld [vmem:[%s534_s3 + $0xd0] sm:$0xff] }
  0x10   :  { %307 = vmatpush3.bf16.msra.mxu1 %v306_v33  ;;  %v146_v44 = vld [vmem:[%s534_s3 + $0xd8] sm:$0xff]  ;;  %v314_v45 = vpack.c.bf16 %v128_v42, %v127_v41  ;;  %v129_v47 = vld [vmem:[%s534_s3 + $0x50] sm:$0xff]  ;;  %v147_v49 = vld [vmem:[%s534_s3 + $0xe0] sm:$0xff]  ;;  %v33_v63 = vshrl.u32 %v32_v62, 7 }
  0x11   :  { %309 = vmatprep.subr.bf16.mxu1 %v308_v34  ;;  %v316_v46 = vpack.c.bf16 %v146_v44, %v145_v43  ;;  %v130_v48 = vld [vmem:[%s534_s3 + $0x58] sm:$0xff]  ;;  %v148_v50 = vld [vmem:[%s534_s3 + $0xe8] sm:$0xff]  ;;  %v131_v53 = vld [vmem:[%s534_s3 + $0x60] sm:$0xff] }
  0x12   :  { %v318_v51 = vpack.c.bf16 %v130_v48, %v129_v47  ;;  %v320_v52 = vpack.c.bf16 %v148_v50, %v147_v49  ;;  %v132_v54 = vld [vmem:[%s534_s3 + $0x68] sm:$0xff]  ;;  %v149_v56 = vld [vmem:[%s534_s3 + $0xf0] sm:$0xff]  ;;  %v150_v57 = vld [vmem:[%s534_s3 + $0xf8] sm:$0xff]  ;;  %v34_v0 = vsub.s32 0, %v33_v63  ;;  %v38_v2 = vsub.s32 1, %v33_v63 }
  0x13   :  { %v322_v55 = vpack.c.bf16 %v132_v54, %v131_v53  ;;  %v324_v58 = vpack.c.bf16 %v150_v57, %v149_v56  ;;  %v133_v59 = vld [vmem:[%s534_s3 + $0x70] sm:$0xff]  ;;  %v134_v60 = vld [vmem:[%s534_s3 + $0x78] sm:$0xff]  ;;  %v30_v1 = vld [vmem:[%s533_s2] sm:$0x3]  ;;  %s359_s2 = smov [#allocation2]  }
  0x14   :  { %311 = vmatpush3.bf16.msra.mxu1 %v310_v39  ;;  %v326_v61 = vpack.c.bf16 %v134_v60, %v133_v59  ;;  %v35_v3 = vrot.slane %v30_v1, %v34_v0  ;;  %v39_v4 = vrot.slane %v30_v1, %v38_v2  ;;  %v251_v12 = vld [vmem:[%s535_s4] ss:$0 sm:$0xff]  ;;  %s242_s23 = sshll.u32 %s359_s2, 4  ;;  %s243_s23 = int_to_ptr.vmem [resolvable:$true] %s242_s23 }
  0x15   :  { %313 = vmatprep.subr.bf16.mxu1 %v312_v40  ;;  %s334_s24 = scalar_lea.vmem %s243_s23, 128  ;;  %p339_p1 = scmp.lt.s32.totalorder %s243_s23, %s243_s23 }
  0x16   :  { %p335_p0 = scmp.ne.s32.totalorder %s243_s23, %s334_s24  ;;  %p340_p2 = scmp.lt.s32.totalorder %s334_s24, %s334_s24 }
  0x18   :  { %315 = vmatpush3.bf16.msra.mxu1 %v314_v45  ;;  %p341_p3 = por %p340_p2, %p339_p1 }
  0x19   :  { %317 = vmatprep.subr.bf16.mxu1 %v316_v46 }
  0x1a   :  { %p342_p4 = pnand %p341_p3, %p335_p0 }
  0x1c   :  { %319 = vmatpush3.bf16.msra.mxu1 %v318_v51 }
  0x1d   :  { %321 = vmatprep.subr.bf16.mxu1 %v320_v52 }
  0x20   :  { %323 = vmatpush3.bf16.msra.mxu1 %v322_v55 }
  0x21   :  { %325 = vmatprep.subr.bf16.mxu1 %v324_v58 }
  0x24   :  { %327 = vmatpush3.bf16.msra.mxu1 %v326_v61 }
  0xdf   :  { %v112_v5 = vpop.f32.mrb[0].mxu0 }
  0xe0   :  { %v113_v6 = vadd.f32 %v112_v5, %v35_v3  ;;  %v114_v7 = vpop.f32.mrb[1].mxu0 }
  0xe1   :  { %v115_v8 = vadd.f32 %v114_v7, %v39_v4 }
  0xe2   :  { %v117_v10 = vmax.f32 %v113_v6, 0.0 }
  0xe3   :  { %v118_v9 = vmax.f32 %v115_v8, 0.0 }
  0xe5   :  { %222 = vmatprep.mubr.f32.mxu1 %v118_v9 }
  0xe6   :  { %223 = vmatmul.mubr.f32.vlgmr.msra.gmra.mrb[0].mxu1 %v117_v10 }
 0x1b9   :  { %v285_v11 = vpop.f32.mrb[0].mxu1 }
 0x1ba   :  { %v286_v13 = vpop.f32.mrb[1].mxu1 }
 0x1bb   :  { %v287_v14 = vadd.f32 %v286_v13, %v285_v11 }
 0x1bd   :  { %v225_v15 = vadd.f32 %v287_v14, %v251_v12 }
 0x1bf   :  { %v252_v16 = vmul.f32 -1.442695, %v225_v15 }
 0x1c1   :  { %330 = vpow2.f32 %v252_v16 }
 0x1cb   :  { %v331_v17 = vpop.eup %330 }
 0x1cc   :  { %v231_v18 = vadd.f32 1.0, %v331_v17 }
 0x1ce   :  { %332 = vrcp.f32 %v231_v18 }
 0x1d8   :  { %v333_v19 = vpop.eup %332 }
 0x1d9   :  { %235 = vst.msk [vmem:[#allocation2] sm:$0xff] %vm234_vm1, %v333_v19 }
 0x1da   :  { %345 = shalt.err (!%p342_p4)
}
 0x1db   :  { %s346_s26 = scalar_lea.hbm %s536_s5, 128 }
 0x1dc   :  { %p347_p5 = scmp.ne.s32.totalorder %s536_s5, %s346_s26  ;;  %p350_p6 = scmp.lt.u32.totalorder %s346_s26, %s536_s5 }
 0x1de   :  { %p352_p7 = pnand %p350_p6, %p347_p5 }
 0x1e0   :  { %355 = shalt.err (!%p352_p7)
}
 0x1e1   :  { %245 = dma.vmem_to_hbm [thread:$0]  %s243_s23, 128, %s536_s5, [#allocation3]  }
 0x1e2   :  { %356 = dma.done.wait [#allocation3], 128  }
 0x1e3   :  { %357 = vsyncadd [#allocation3], 4294967168 }
 0x1e4   :  { %249 = vsyncpa [#allocation3], 1 }

</bundles_post_ra>
